<compile_context>
chip_gen: v7x
topology: tpu7x:2x2x1
jax: 0.10.0
libtpu: 0.0.40
codegen_flags: <defaults>
</compile_context>

<pallas_src>
import jax
import jax.numpy as jnp
from jax.experimental import pallas as pl
from jax.experimental.pallas import tpu as pltpu

LN_EPS = 1e-5
_MIB = 1024 * 1024


def _patch_embed_kernel(x_ref, w_ref, b_ref, g2_ref, b2_ref, pos_ref, cls_ref,
                        o_ref):
    """One batch-block (TB batch elements = TM = TB*N flattened patch rows) per step.

    x_ref  : (TM, PATCH_DIM) bf16  flattened patches ('b c (n p) -> (b n) (p c)')
    w_ref  : (PATCH_DIM, DIM) bf16 LN1-affine-folded linear weight (g1[:,None] * W)
    b_ref  : (1, DIM)        f32   folded bias (b1 @ W + linear bias)
    g2/b2  : (1, DIM)        f32   LayerNorm(dim) scale / shift
    pos_ref: (N, DIM)        f32   pos_embedding[0, 1:]
    cls_ref: (1, DIM)        f32   cls_token + pos_embedding[0, 0]
    o_ref  : (TB, N+1, DIM)  f32   final output block (cls row + patch rows)
    """
    x = x_ref[...].astype(jnp.float32)

    # LayerNorm over patch_dim (affine folded into the matmul). Two-pass
    # variance so unnormalized raw inputs (|mu| >> sigma) don't cancel.
    mu = jnp.mean(x, axis=-1, keepdims=True)
    xc = x - mu
    var = jnp.mean(xc * xc, axis=-1, keepdims=True)
    xn = xc * jax.lax.rsqrt(var + LN_EPS)

    # Linear(patch_dim -> dim): bf16 MXU operands, f32 accumulation.
    y = jnp.dot(xn.astype(jnp.bfloat16), w_ref[...],
                preferred_element_type=jnp.float32) + b_ref[...]

    # LayerNorm over dim: post-matmul stats are benign -> fused one-pass form
    # (independent XLU reductions).
    mu2 = jnp.mean(y, axis=-1, keepdims=True)
    var2 = jnp.maximum(jnp.mean(y * y, axis=-1, keepdims=True) - mu2 * mu2, 0.0)
    yn = (y - mu2) * jax.lax.rsqrt(var2 + LN_EPS) * g2_ref[...] + b2_ref[...]

    # Scatter rows into the final (TB, N+1, DIM) layout: row 0 = cls+pos[0],
    # rows 1..N = patch rows + pos[1:]. Static loop: TB known at trace time.
    pos = pos_ref[...]
    cls_row = cls_ref[...]
    n = pos.shape[0]
    tb = o_ref.shape[0]
    for t in range(tb):
        o_ref[t, 0:1, :] = cls_row
        o_ref[t, 1:, :] = yn[t * n:(t + 1) * n, :] + pos
    # emb_dropout = 0.0 -> Dropout is the identity (nothing to do).


def _tpu_vmem_info():
    """Returns (per-core VMEM bytes, heuristic 'this chip has 2 TensorCores')."""
    vmem = 128 * _MIB
    try:
        info = pltpu.get_tpu_info()
        vmem = int(getattr(info, "vmem_capacity_bytes", vmem))
    except Exception:
        pass
    two_tc = vmem <= 64 * _MIB  # v7x-class: 64 MiB VMEM per TC, 2 TCs per chip
    return vmem, two_tc


def _pick_batch_block(b, n, patch_dim, dim, *, vmem_limit, two_tc):
    """Pick TB = batch elements per grid step (output block is (TB, N+1, DIM)).

    Keeps the flattened row block (TB*N) sublane aligned (multiple of 8 or the
    full array) and keeps an intermediate-aware per-step VMEM estimate inside a
    fraction of vmem_limit.  v7x prefers an even >=2-step grid (2 TCs sharing a
    parallel axis); v5e/v6e prefer the fewest (largest) steps (serial grid).
    """
    total_rows = b * n
    budget = int(vmem_limit * 0.6)
    max_rows = 1024 if two_tc else 2048

    def step_bytes(tb):
        tm = tb * n
        x_in = 2 * tm * patch_dim * 2                # bf16 patch rows, double-buffered
        out = 2 * tb * (n + 1) * dim * 4             # f32 output block, double-buffered
        consts = 2 * (patch_dim * dim * 2 + (n + 8) * dim * 4)  # W'(bf16)+pos+vectors
        temps = tm * (3 * patch_dim + 3 * dim) * 4   # f32 intermediates (x, xc/xn, y, yn)
        return x_in + out + consts + temps

    def aligned(tb):
        tm = tb * n
        return tm == total_rows or tm % 8 == 0

    divisors = [d for d in range(1, b + 1) if b % d == 0]
    fitting = [d for d in divisors
               if aligned(d) and d * n <= max_rows and step_bytes(d) <= budget]
    if not fitting:
        legal = [d for d in divisors if aligned(d)]
        return legal[0] if legal else b              # smallest legal block
    if two_tc:
        even = [d for d in fitting if (b // d) >= 2 and (b // d) % 2 == 0]
        multi = [d for d in fitting if (b // d) >= 2]
        pool = even or multi or fitting
        return max(pool)
    return max(fitting)                              # serial grid: fewest, biggest steps


def _call_kernel(x2d, w_f, b_f, g2, b2, pos_patch, cls_pos0, *,
                 b, n, tb, patch_dim, dim, vmem_limit, single_buffer):
    tm = tb * n

    def const_spec(shape):
        zeros = (0,) * len(shape)
        index_map = lambda i: zeros
        if single_buffer:
            # Fetched once; keep a single VMEM buffer instead of double-buffering.
            return pl.BlockSpec(shape, index_map, pipeline_mode=pl.Buffered(1))
        return pl.BlockSpec(shape, index_map)

    return pl.pallas_call(
        _patch_embed_kernel,
        out_shape=jax.ShapeDtypeStruct((b, n + 1, dim), jnp.float32),
        grid_spec=pltpu.PrefetchScalarGridSpec(
            num_scalar_prefetch=0,
            grid=(b // tb,),
            in_specs=[
                pl.BlockSpec((tm, patch_dim), lambda i: (i, 0)),  # patch rows (streamed)
                const_spec((patch_dim, dim)),                     # folded W (bf16)
                const_spec((1, dim)),                             # folded bias
                const_spec((1, dim)),                             # ln2 gamma
                const_spec((1, dim)),                             # ln2 beta
                const_spec((n, dim)),                             # pos_embedding[0, 1:]
                const_spec((1, dim)),                             # cls + pos_embedding[0, 0]
            ],
            out_specs=pl.BlockSpec((tb, n + 1, dim), lambda i: (i, 0, 0)),
        ),
        compiler_params=pltpu.CompilerParams(
            dimension_semantics=("parallel",),
            vmem_limit_bytes=vmem_limit,
        ),
    )(x2d, w_f, b_f, g2, b2, pos_patch, cls_pos0)


def positional_embedding_forward(series, params, *, patch_size):
    """series: (B, C, SEQ) float32.  Returns (x, ps) like the torch module."""
    b, c, seq = series.shape
    assert seq % patch_size == 0
    n = seq // patch_size
    patch_dim = c * patch_size
    dim = params["w"].shape[1]

    # einops Rearrange 'b c (n p) -> b n (p c)', flattened to rows + bf16 cast
    # (one fused XLA pass over the input; halves the dominant HBM read).
    # TODO(synk): fold this rearrange into the kernel (per-channel partial
    # matmuls y += x_c @ W_c) to avoid the extra HBM pass for long sequences.
    patches = jnp.transpose(series.reshape(b, c, n, patch_size), (0, 2, 3, 1))
    x2d = patches.reshape(b * n, patch_dim).astype(jnp.bfloat16)

    # Fold LayerNorm(patch_dim)'s affine into the linear layer:
    #   (xn*g1 + b1) @ W + bl == xn @ (g1[:,None]*W) + (b1 @ W + bl)
    w_f = (params["ln1_g"][0][:, None] * params["w"]).astype(jnp.bfloat16)
    b_f = (params["ln1_b"] @ params["w"] + params["b"]).astype(jnp.float32)

    pos_patch = params["pos"][0, 1:, :]                   # (n, dim)
    cls_pos0 = params["cls"] + params["pos"][0, 0:1, :]   # (1, dim)

    vmem_cap, two_tc = _tpu_vmem_info()
    vmem_limit = int(max(32 * _MIB, min(vmem_cap - 16 * _MIB, 100 * _MIB)))
    tb = _pick_batch_block(b, n, patch_dim, dim,
                           vmem_limit=vmem_limit, two_tc=two_tc)

    # TODO(synk): for dim < 128, pad the feature dim to a lane multiple (128/256)
    # to avoid masked vst stores; skipped here to keep a single output pass.
    kw = dict(b=b, n=n, tb=tb, patch_dim=patch_dim, dim=dim,
              vmem_limit=vmem_limit)
    args = (x2d, w_f, b_f, params["ln2_g"], params["ln2_b"], pos_patch, cls_pos0)
    try:
        out = _call_kernel(*args, single_buffer=True, **kw)
        out = jax.block_until_ready(out)
    except Exception:
        # Fallback: this jax/pallas version's pipeliner rejects Buffered(1) on
        # constant operands; default double-buffering costs only a second VMEM
        # copy of W/pos, nothing else.
        out = _call_kernel(*args, single_buffer=False, **kw)

    # einops.pack([cls_tokens, x], 'b * d') packed-shape metadata
    ps = [(), (n,)]
    return out, ps


def init_params(key, *, seq_len, patch_size, dim, channels):
    num_patches = seq_len // patch_size
    patch_dim = channels * patch_size
    k_w, k_b, k_pos, k_cls = jax.random.split(key, 4)
    bound = 1.0 / (patch_dim ** 0.5)
    return {
        # LayerNorm defaults: weight=1, bias=0
        "ln1_g": jnp.ones((1, patch_dim), jnp.float32),
        "ln1_b": jnp.zeros((1, patch_dim), jnp.float32),
        # Linear(patch_dim, dim): stored as (patch_dim, dim) = torch W.T
        "w": jax.random.uniform(k_w, (patch_dim, dim), jnp.float32,
                                minval=-bound, maxval=bound),
        "b": jax.random.uniform(k_b, (1, dim), jnp.float32,
                                minval=-bound, maxval=bound),
        "ln2_g": jnp.ones((1, dim), jnp.float32),
        "ln2_b": jnp.zeros((1, dim), jnp.float32),
        # torch.randn parameters
        "pos": jax.random.normal(k_pos, (1, num_patches + 1, dim), jnp.float32),
        "cls": jax.random.normal(k_cls, (1, dim), jnp.float32),
    }


def _reference(series, params, *, patch_size):
    """Pure-JAX all-f32 reference (mirrors the torch module exactly)."""
    b, c, seq = series.shape
    n = seq // patch_size
    patch_dim = c * patch_size
    x = series.reshape(b, c, n, patch_size).transpose(0, 2, 3, 1).reshape(b, n, patch_dim)

    def ln(v, g, bta):
        mu = v.mean(-1, keepdims=True)
        var = ((v - mu) ** 2).mean(-1, keepdims=True)
        return (v - mu) / jnp.sqrt(var + LN_EPS) * g + bta

    x = ln(x, params["ln1_g"][0], params["ln1_b"][0])
    x = x @ params["w"] + params["b"][0]
    x = ln(x, params["ln2_g"][0], params["ln2_b"][0])
    cls = jnp.broadcast_to(params["cls"], (b, 1, x.shape[-1]))
    x = jnp.concatenate([cls, x], axis=1)
    x = x + params["pos"][:, : n + 1]
    return x


if __name__ == "__main__":
    # small shapes consistent with the module
    B, C, SEQ = 2, 4, 16
    PATCH = 4
    DIM = 32

    key = jax.random.PRNGKey(0)
    k_x, k_p = jax.random.split(key)
    series = jax.random.normal(k_x, (B, C, SEQ), jnp.float32)
    params = init_params(k_p, seq_len=SEQ, patch_size=PATCH, dim=DIM, channels=C)

    out, ps = positional_embedding_forward(series, params, patch_size=PATCH)
    out = jax.block_until_ready(out)

    ref = _reference(series, params, patch_size=PATCH)
    assert out.shape == (B, SEQ // PATCH + 1, DIM), out.shape
    # bf16 patch stream + bf16 MXU operands (f32 accumulation) vs an all-f32
    # torch-semantics reference -> loose tolerance (documented quantization).
    err = float(jnp.max(jnp.abs(out - ref)))
    assert jnp.allclose(out, ref, atol=5e-2, rtol=5e-2), err
    print("KERNEL_OK")
</pallas_src>

<mosaic_0001>
module attributes {stable_mosaic.version = 11 : i64} {
  func.func @_patch_embed_kernel(%arg0: i32, %arg1: memref<8x16xbf16, #tpu.memory_space<vmem>>, %arg2: memref<16x32xbf16, #tpu.memory_space<vmem>>, %arg3: memref<1x32xf32, #tpu.memory_space<vmem>>, %arg4: memref<1x32xf32, #tpu.memory_space<vmem>>, %arg5: memref<1x32xf32, #tpu.memory_space<vmem>>, %arg6: memref<4x32xf32, #tpu.memory_space<vmem>>, %arg7: memref<1x32xf32, #tpu.memory_space<vmem>>, %arg8: memref<2x5x32xf32, #tpu.memory_space<vmem>>) attributes {dimension_semantics = [#tpu.dimension_semantics<parallel>], iteration_bounds = array<i64: 1>, scalar_prefetch = 0 : i64, scratch_operands = 0 : i64, tpu.core_type = #tpu.core_type<tc>, window_params = [{transform_indices = @transform_0, window_bounds = array<i64: 8, 16>}, {pipeline_mode = #tpu.pipeline_mode<synchronous>, transform_indices = @transform_1, window_bounds = array<i64: 16, 32>}, {pipeline_mode = #tpu.pipeline_mode<synchronous>, transform_indices = @transform_2, window_bounds = array<i64: 1, 32>}, {pipeline_mode = #tpu.pipeline_mode<synchronous>, transform_indices = @transform_3, window_bounds = array<i64: 1, 32>}, {pipeline_mode = #tpu.pipeline_mode<synchronous>, transform_indices = @transform_4, window_bounds = array<i64: 1, 32>}, {pipeline_mode = #tpu.pipeline_mode<synchronous>, transform_indices = @transform_5, window_bounds = array<i64: 4, 32>}, {pipeline_mode = #tpu.pipeline_mode<synchronous>, transform_indices = @transform_6, window_bounds = array<i64: 1, 32>}, {transform_indices = @transform_7, window_bounds = array<i64: 2, 5, 32>}]} {
    %c0 = arith.constant 0 : index
    %c0_0 = arith.constant 0 : index
    %0 = vector.load %arg1[%c0, %c0_0] : memref<8x16xbf16, #tpu.memory_space<vmem>>, vector<8x16xbf16>
    %1 = arith.extf %0 : vector<8x16xbf16> to vector<8x16xf32>
    %cst = arith.constant dense<0.000000e+00> : vector<8xf32>
    %2 = vector.multi_reduction <add>, %1, %cst [1] : vector<8x16xf32> to vector<8xf32>
    %3 = vector.shape_cast %2 : vector<8xf32> to vector<8x1xf32>
    %cst_1 = arith.constant 1.600000e+01 : f32
    %4 = vector.broadcast %cst_1 : f32 to vector<8x1xf32>
    %5 = arith.divf %3, %4 : vector<8x1xf32>
    %6 = vector.broadcast %5 : vector<8x1xf32> to vector<8x16xf32>
    %7 = arith.subf %1, %6 : vector<8x16xf32>
    %8 = arith.mulf %7, %7 : vector<8x16xf32>
    %cst_2 = arith.constant dense<0.000000e+00> : vector<8xf32>
    %9 = vector.multi_reduction <add>, %8, %cst_2 [1] : vector<8x16xf32> to vector<8xf32>
    %10 = vector.shape_cast %9 : vector<8xf32> to vector<8x1xf32>
    %cst_3 = arith.constant 1.600000e+01 : f32
    %11 = vector.broadcast %cst_3 : f32 to vector<8x1xf32>
    %12 = arith.divf %10, %11 : vector<8x1xf32>
    %cst_4 = arith.constant 9.99999974E-6 : f32
    %13 = vector.broadcast %cst_4 : f32 to vector<8x1xf32>
    %14 = arith.addf %12, %13 : vector<8x1xf32>
    %15 = math.rsqrt %14 : vector<8x1xf32>
    %16 = vector.broadcast %15 : vector<8x1xf32> to vector<8x16xf32>
    %17 = arith.mulf %7, %16 : vector<8x16xf32>
    %18 = arith.truncf %17 : vector<8x16xf32> to vector<8x16xbf16>
    %c0_5 = arith.constant 0 : index
    %c0_6 = arith.constant 0 : index
    %19 = vector.load %arg2[%c0_5, %c0_6] : memref<16x32xbf16, #tpu.memory_space<vmem>>, vector<16x32xbf16>
    %cst_7 = arith.constant dense<0.000000e+00> : vector<8x32xf32>
    %20 = tpu.matmul %18, %19, %cst_7 {dimension_numbers = #tpu.dot_dimension_numbers<[1], [0], [0], [1], [0, 0, 1, 1], [], []>} : vector<8x16xbf16>, vector<16x32xbf16>, vector<8x32xf32> -> vector<8x32xf32>
    %c0_8 = arith.constant 0 : index
    %c0_9 = arith.constant 0 : index
    %21 = vector.load %arg3[%c0_8, %c0_9] : memref<1x32xf32, #tpu.memory_space<vmem>>, vector<1x32xf32>
    %22 = vector.broadcast %21 : vector<1x32xf32> to vector<8x32xf32>
    %23 = arith.addf %20, %22 : vector<8x32xf32>
    %cst_10 = arith.constant dense<0.000000e+00> : vector<8xf32>
    %24 = vector.multi_reduction <add>, %23, %cst_10 [1] : vector<8x32xf32> to vector<8xf32>
    %25 = vector.shape_cast %24 : vector<8xf32> to vector<8x1xf32>
    %cst_11 = arith.constant 3.200000e+01 : f32
    %26 = vector.broadcast %cst_11 : f32 to vector<8x1xf32>
    %27 = arith.divf %25, %26 : vector<8x1xf32>
    %28 = arith.mulf %23, %23 : vector<8x32xf32>
    %cst_12 = arith.constant dense<0.000000e+00> : vector<8xf32>
    %29 = vector.multi_reduction <add>, %28, %cst_12 [1] : vector<8x32xf32> to vector<8xf32>
    %30 = vector.shape_cast %29 : vector<8xf32> to vector<8x1xf32>
    %cst_13 = arith.constant 3.200000e+01 : f32
    %31 = vector.broadcast %cst_13 : f32 to vector<8x1xf32>
    %32 = arith.divf %30, %31 : vector<8x1xf32>
    %33 = arith.mulf %27, %27 : vector<8x1xf32>
    %34 = arith.subf %32, %33 : vector<8x1xf32>
    %cst_14 = arith.constant 0.000000e+00 : f32
    %35 = vector.broadcast %cst_14 : f32 to vector<8x1xf32>
    %36 = arith.maximumf %34, %35 : vector<8x1xf32>
    %37 = vector.broadcast %27 : vector<8x1xf32> to vector<8x32xf32>
    %38 = arith.subf %23, %37 : vector<8x32xf32>
    %cst_15 = arith.constant 9.99999974E-6 : f32
    %39 = vector.broadcast %cst_15 : f32 to vector<8x1xf32>
    %40 = arith.addf %36, %39 : vector<8x1xf32>
    %41 = math.rsqrt %40 : vector<8x1xf32>
    %42 = vector.broadcast %41 : vector<8x1xf32> to vector<8x32xf32>
    %43 = arith.mulf %38, %42 : vector<8x32xf32>
    %c0_16 = arith.constant 0 : index
    %c0_17 = arith.constant 0 : index
    %44 = vector.load %arg4[%c0_16, %c0_17] : memref<1x32xf32, #tpu.memory_space<vmem>>, vector<1x32xf32>
    %45 = vector.broadcast %44 : vector<1x32xf32> to vector<8x32xf32>
    %46 = arith.mulf %43, %45 : vector<8x32xf32>
    %c0_18 = arith.constant 0 : index
    %c0_19 = arith.constant 0 : index
    %47 = vector.load %arg5[%c0_18, %c0_19] : memref<1x32xf32, #tpu.memory_space<vmem>>, vector<1x32xf32>
    %48 = vector.broadcast %47 : vector<1x32xf32> to vector<8x32xf32>
    %49 = arith.addf %46, %48 : vector<8x32xf32>
    %c0_20 = arith.constant 0 : index
    %c0_21 = arith.constant 0 : index
    %50 = vector.load %arg6[%c0_20, %c0_21] : memref<4x32xf32, #tpu.memory_space<vmem>>, vector<4x32xf32>
    %c0_22 = arith.constant 0 : index
    %c0_23 = arith.constant 0 : index
    %51 = vector.load %arg7[%c0_22, %c0_23] : memref<1x32xf32, #tpu.memory_space<vmem>>, vector<1x32xf32>
    %c0_24 = arith.constant 0 : index
    %c0_25 = arith.constant 0 : index
    %c0_26 = arith.constant 0 : index
    %52 = vector.load %arg8[%c0_24, %c0_25, %c0_26] : memref<2x5x32xf32, #tpu.memory_space<vmem>>, vector<1x1x32xf32>
    %53 = vector.shape_cast %52 : vector<1x1x32xf32> to vector<1x32xf32>
    %54 = vector.shape_cast %51 : vector<1x32xf32> to vector<1x1x32xf32>
    tpu.vector_store %arg8[%c0_24, %c0_25, %c0_26], %54 {strides = array<i32>} : memref<2x5x32xf32, #tpu.memory_space<vmem>>, vector<1x1x32xf32>,
    %55 = vector.extract_strided_slice %49 {offsets = [0, 0], sizes = [4, 32], strides = [1, 1]} : vector<8x32xf32> to vector<4x32xf32>
    %56 = arith.addf %55, %50 : vector<4x32xf32>
    %c0_27 = arith.constant 0 : index
    %c1 = arith.constant 1 : index
    %c0_28 = arith.constant 0 : index
    %57 = vector.load %arg8[%c0_27, %c1, %c0_28] : memref<2x5x32xf32, #tpu.memory_space<vmem>>, vector<1x4x32xf32>
    %58 = vector.shape_cast %57 : vector<1x4x32xf32> to vector<4x32xf32>
    %59 = vector.shape_cast %56 : vector<4x32xf32> to vector<1x4x32xf32>
    tpu.vector_store %arg8[%c0_27, %c1, %c0_28], %59 {strides = array<i32>} : memref<2x5x32xf32, #tpu.memory_space<vmem>>, vector<1x4x32xf32>,
    %c1_29 = arith.constant 1 : index
    %c0_30 = arith.constant 0 : index
    %c0_31 = arith.constant 0 : index
    %60 = vector.load %arg8[%c1_29, %c0_30, %c0_31] : memref<2x5x32xf32, #tpu.memory_space<vmem>>, vector<1x1x32xf32>
    %61 = vector.shape_cast %60 : vector<1x1x32xf32> to vector<1x32xf32>
    %62 = vector.shape_cast %51 : vector<1x32xf32> to vector<1x1x32xf32>
    tpu.vector_store %arg8[%c1_29, %c0_30, %c0_31], %62 {strides = array<i32>} : memref<2x5x32xf32, #tpu.memory_space<vmem>>, vector<1x1x32xf32>,
    %63 = vector.extract_strided_slice %49 {offsets = [4, 0], sizes = [4, 32], strides = [1, 1]} : vector<8x32xf32> to vector<4x32xf32>
    %64 = arith.addf %63, %50 : vector<4x32xf32>
    %c1_32 = arith.constant 1 : index
    %c1_33 = arith.constant 1 : index
    %c0_34 = arith.constant 0 : index
    %65 = vector.load %arg8[%c1_32, %c1_33, %c0_34] : memref<2x5x32xf32, #tpu.memory_space<vmem>>, vector<1x4x32xf32>
    %66 = vector.shape_cast %65 : vector<1x4x32xf32> to vector<4x32xf32>
    %67 = vector.shape_cast %64 : vector<4x32xf32> to vector<1x4x32xf32>
    tpu.vector_store %arg8[%c1_32, %c1_33, %c0_34], %67 {strides = array<i32>} : memref<2x5x32xf32, #tpu.memory_space<vmem>>, vector<1x4x32xf32>,
    return
  }
  func.func @transform_0(%arg0: i32) -> (i32, i32) {
    %c0_i32 = arith.constant 0 : i32
    %c0_i32_0 = arith.constant 0 : i32
    return %arg0, %c0_i32 : i32, i32
  }
  func.func @transform_1(%arg0: i32) -> (i32, i32) {
    %c0_i32 = arith.constant 0 : i32
    %c0_i32_0 = arith.constant 0 : i32
    %c0_i32_1 = arith.constant 0 : i32
    return %c0_i32, %c0_i32_0 : i32, i32
  }
  func.func @transform_2(%arg0: i32) -> (i32, i32) {
    %c0_i32 = arith.constant 0 : i32
    %c0_i32_0 = arith.constant 0 : i32
    %c0_i32_1 = arith.constant 0 : i32
    return %c0_i32, %c0_i32_0 : i32, i32
  }
  func.func @transform_3(%arg0: i32) -> (i32, i32) {
    %c0_i32 = arith.constant 0 : i32
    %c0_i32_0 = arith.constant 0 : i32
    %c0_i32_1 = arith.constant 0 : i32
    return %c0_i32, %c0_i32_0 : i32, i32
  }
  func.func @transform_4(%arg0: i32) -> (i32, i32) {
    %c0_i32 = arith.constant 0 : i32
    %c0_i32_0 = arith.constant 0 : i32
    %c0_i32_1 = arith.constant 0 : i32
    return %c0_i32, %c0_i32_0 : i32, i32
  }
  func.func @transform_5(%arg0: i32) -> (i32, i32) {
    %c0_i32 = arith.constant 0 : i32
    %c0_i32_0 = arith.constant 0 : i32
    %c0_i32_1 = arith.constant 0 : i32
    return %c0_i32, %c0_i32_0 : i32, i32
  }
  func.func @transform_6(%arg0: i32) -> (i32, i32) {
    %c0_i32 = arith.constant 0 : i32
    %c0_i32_0 = arith.constant 0 : i32
    %c0_i32_1 = arith.constant 0 : i32
    return %c0_i32, %c0_i32_0 : i32, i32
  }
  func.func @transform_7(%arg0: i32) -> (i32, i32, i32) {
    %c0_i32 = arith.constant 0 : i32
    %c0_i32_0 = arith.constant 0 : i32
    %c0_i32_1 = arith.constant 0 : i32
    return %arg0, %c0_i32, %c0_i32_0 : i32, i32, i32
  }
}

module attributes {stable_mosaic.version = 11 : i64} {
  func.func @_patch_embed_kernel(%arg0: i32, %arg1: memref<8x16xbf16, #tpu.memory_space<vmem>>, %arg2: memref<16x32xbf16, #tpu.memory_space<vmem>>, %arg3: memref<1x32xf32, #tpu.memory_space<vmem>>, %arg4: memref<1x32xf32, #tpu.memory_space<vmem>>, %arg5: memref<1x32xf32, #tpu.memory_space<vmem>>, %arg6: memref<4x32xf32, #tpu.memory_space<vmem>>, %arg7: memref<1x32xf32, #tpu.memory_space<vmem>>, %arg8: memref<2x5x32xf32, #tpu.memory_space<vmem>>) attributes {dimension_semantics = [#tpu.dimension_semantics<parallel>], iteration_bounds = array<i64: 1>, scalar_prefetch = 0 : i64, scratch_operands = 0 : i64, tpu.core_type = #tpu.core_type<tc>, window_params = [{transform_indices = @transform_0, window_bounds = array<i64: 8, 16>}, {pipeline_mode = #tpu.pipeline_mode<synchronous>, transform_indices = @transform_1, window_bounds = array<i64: 16, 32>}, {pipeline_mode = #tpu.pipeline_mode<synchronous>, transform_indices = @transform_2, window_bounds = array<i64: 1, 32>}, {pipeline_mode = #tpu.pipeline_mode<synchronous>, transform_indices = @transform_3, window_bounds = array<i64: 1, 32>}, {pipeline_mode = #tpu.pipeline_mode<synchronous>, transform_indices = @transform_4, window_bounds = array<i64: 1, 32>}, {pipeline_mode = #tpu.pipeline_mode<synchronous>, transform_indices = @transform_5, window_bounds = array<i64: 4, 32>}, {pipeline_mode = #tpu.pipeline_mode<synchronous>, transform_indices = @transform_6, window_bounds = array<i64: 1, 32>}, {transform_indices = @transform_7, window_bounds = array<i64: 2, 5, 32>}]} {
    %c0 = arith.constant 0 : index
    %c0_0 = arith.constant 0 : index
    %0 = vector.load %arg1[%c0, %c0_0] : memref<8x16xbf16, #tpu.memory_space<vmem>>, vector<8x16xbf16>
    %1 = arith.extf %0 : vector<8x16xbf16> to vector<8x16xf32>
    %cst = arith.constant dense<0.000000e+00> : vector<8xf32>
    %2 = vector.multi_reduction <add>, %1, %cst [1] : vector<8x16xf32> to vector<8xf32>
    %3 = vector.shape_cast %2 : vector<8xf32> to vector<8x1xf32>
    %cst_1 = arith.constant 1.600000e+01 : f32
    %4 = vector.broadcast %cst_1 : f32 to vector<8x1xf32>
    %5 = arith.divf %3, %4 : vector<8x1xf32>
    %6 = vector.broadcast %5 : vector<8x1xf32> to vector<8x16xf32>
    %7 = arith.subf %1, %6 : vector<8x16xf32>
    %8 = arith.mulf %7, %7 : vector<8x16xf32>
    %cst_2 = arith.constant dense<0.000000e+00> : vector<8xf32>
    %9 = vector.multi_reduction <add>, %8, %cst_2 [1] : vector<8x16xf32> to vector<8xf32>
    %10 = vector.shape_cast %9 : vector<8xf32> to vector<8x1xf32>
    %cst_3 = arith.constant 1.600000e+01 : f32
    %11 = vector.broadcast %cst_3 : f32 to vector<8x1xf32>
    %12 = arith.divf %10, %11 : vector<8x1xf32>
    %cst_4 = arith.constant 9.99999974E-6 : f32
    %13 = vector.broadcast %cst_4 : f32 to vector<8x1xf32>
    %14 = arith.addf %12, %13 : vector<8x1xf32>
    %15 = math.rsqrt %14 : vector<8x1xf32>
    %16 = vector.broadcast %15 : vector<8x1xf32> to vector<8x16xf32>
    %17 = arith.mulf %7, %16 : vector<8x16xf32>
    %18 = arith.truncf %17 : vector<8x16xf32> to vector<8x16xbf16>
    %c0_5 = arith.constant 0 : index
    %c0_6 = arith.constant 0 : index
    %19 = vector.load %arg2[%c0_5, %c0_6] : memref<16x32xbf16, #tpu.memory_space<vmem>>, vector<16x32xbf16>
    %cst_7 = arith.constant dense<0.000000e+00> : vector<8x32xf32>
    %20 = tpu.matmul %18, %19, %cst_7 {dimension_numbers = #tpu.dot_dimension_numbers<[1], [0], [0], [1], [0, 0, 1, 1], [], []>} : vector<8x16xbf16>, vector<16x32xbf16>, vector<8x32xf32> -> vector<8x32xf32>
    %c0_8 = arith.constant 0 : index
    %c0_9 = arith.constant 0 : index
    %21 = vector.load %arg3[%c0_8, %c0_9] : memref<1x32xf32, #tpu.memory_space<vmem>>, vector<1x32xf32>
    %22 = vector.broadcast %21 : vector<1x32xf32> to vector<8x32xf32>
    %23 = arith.addf %20, %22 : vector<8x32xf32>
    %cst_10 = arith.constant dense<0.000000e+00> : vector<8xf32>
    %24 = vector.multi_reduction <add>, %23, %cst_10 [1] : vector<8x32xf32> to vector<8xf32>
    %25 = vector.shape_cast %24 : vector<8xf32> to vector<8x1xf32>
    %cst_11 = arith.constant 3.200000e+01 : f32
    %26 = vector.broadcast %cst_11 : f32 to vector<8x1xf32>
    %27 = arith.divf %25, %26 : vector<8x1xf32>
    %28 = arith.mulf %23, %23 : vector<8x32xf32>
    %cst_12 = arith.constant dense<0.000000e+00> : vector<8xf32>
    %29 = vector.multi_reduction <add>, %28, %cst_12 [1] : vector<8x32xf32> to vector<8xf32>
    %30 = vector.shape_cast %29 : vector<8xf32> to vector<8x1xf32>
    %cst_13 = arith.constant 3.200000e+01 : f32
    %31 = vector.broadcast %cst_13 : f32 to vector<8x1xf32>
    %32 = arith.divf %30, %31 : vector<8x1xf32>
    %33 = arith.mulf %27, %27 : vector<8x1xf32>
    %34 = arith.subf %32, %33 : vector<8x1xf32>
    %cst_14 = arith.constant 0.000000e+00 : f32
    %35 = vector.broadcast %cst_14 : f32 to vector<8x1xf32>
    %36 = arith.maximumf %34, %35 : vector<8x1xf32>
    %37 = vector.broadcast %27 : vector<8x1xf32> to vector<8x32xf32>
    %38 = arith.subf %23, %37 : vector<8x32xf32>
    %cst_15 = arith.constant 9.99999974E-6 : f32
    %39 = vector.broadcast %cst_15 : f32 to vector<8x1xf32>
    %40 = arith.addf %36, %39 : vector<8x1xf32>
    %41 = math.rsqrt %40 : vector<8x1xf32>
    %42 = vector.broadcast %41 : vector<8x1xf32> to vector<8x32xf32>
    %43 = arith.mulf %38, %42 : vector<8x32xf32>
    %c0_16 = arith.constant 0 : index
    %c0_17 = arith.constant 0 : index
    %44 = vector.load %arg4[%c0_16, %c0_17] : memref<1x32xf32, #tpu.memory_space<vmem>>, vector<1x32xf32>
    %45 = vector.broadcast %44 : vector<1x32xf32> to vector<8x32xf32>
    %46 = arith.mulf %43, %45 : vector<8x32xf32>
    %c0_18 = arith.constant 0 : index
    %c0_19 = arith.constant 0 : index
    %47 = vector.load %arg5[%c0_18, %c0_19] : memref<1x32xf32, #tpu.memory_space<vmem>>, vector<1x32xf32>
    %48 = vector.broadcast %47 : vector<1x32xf32> to vector<8x32xf32>
    %49 = arith.addf %46, %48 : vector<8x32xf32>
    %c0_20 = arith.constant 0 : index
    %c0_21 = arith.constant 0 : index
    %50 = vector.load %arg6[%c0_20, %c0_21] : memref<4x32xf32, #tpu.memory_space<vmem>>, vector<4x32xf32>
    %c0_22 = arith.constant 0 : index
    %c0_23 = arith.constant 0 : index
    %51 = vector.load %arg7[%c0_22, %c0_23] : memref<1x32xf32, #tpu.memory_space<vmem>>, vector<1x32xf32>
    %c0_24 = arith.constant 0 : index
    %c0_25 = arith.constant 0 : index
    %c0_26 = arith.constant 0 : index
    %52 = vector.load %arg8[%c0_24, %c0_25, %c0_26] : memref<2x5x32xf32, #tpu.memory_space<vmem>>, vector<1x1x32xf32>
    %53 = vector.shape_cast %52 : vector<1x1x32xf32> to vector<1x32xf32>
    %54 = vector.shape_cast %51 : vector<1x32xf32> to vector<1x1x32xf32>
    tpu.vector_store %arg8[%c0_24, %c0_25, %c0_26], %54 {strides = array<i32>} : memref<2x5x32xf32, #tpu.memory_space<vmem>>, vector<1x1x32xf32>,
    %55 = vector.extract_strided_slice %49 {offsets = [0, 0], sizes = [4, 32], strides = [1, 1]} : vector<8x32xf32> to vector<4x32xf32>
    %56 = arith.addf %55, %50 : vector<4x32xf32>
    %c0_27 = arith.constant 0 : index
    %c1 = arith.constant 1 : index
    %c0_28 = arith.constant 0 : index
    %57 = vector.load %arg8[%c0_27, %c1, %c0_28] : memref<2x5x32xf32, #tpu.memory_space<vmem>>, vector<1x4x32xf32>
    %58 = vector.shape_cast %57 : vector<1x4x32xf32> to vector<4x32xf32>
    %59 = vector.shape_cast %56 : vector<4x32xf32> to vector<1x4x32xf32>
    tpu.vector_store %arg8[%c0_27, %c1, %c0_28], %59 {strides = array<i32>} : memref<2x5x32xf32, #tpu.memory_space<vmem>>, vector<1x4x32xf32>,
    %c1_29 = arith.constant 1 : index
    %c0_30 = arith.constant 0 : index
    %c0_31 = arith.constant 0 : index
    %60 = vector.load %arg8[%c1_29, %c0_30, %c0_31] : memref<2x5x32xf32, #tpu.memory_space<vmem>>, vector<1x1x32xf32>
    %61 = vector.shape_cast %60 : vector<1x1x32xf32> to vector<1x32xf32>
    %62 = vector.shape_cast %51 : vector<1x32xf32> to vector<1x1x32xf32>
    tpu.vector_store %arg8[%c1_29, %c0_30, %c0_31], %62 {strides = array<i32>} : memref<2x5x32xf32, #tpu.memory_space<vmem>>, vector<1x1x32xf32>,
    %63 = vector.extract_strided_slice %49 {offsets = [4, 0], sizes = [4, 32], strides = [1, 1]} : vector<8x32xf32> to vector<4x32xf32>
    %64 = arith.addf %63, %50 : vector<4x32xf32>
    %c1_32 = arith.constant 1 : index
    %c1_33 = arith.constant 1 : index
    %c0_34 = arith.constant 0 : index
    %65 = vector.load %arg8[%c1_32, %c1_33, %c0_34] : memref<2x5x32xf32, #tpu.memory_space<vmem>>, vector<1x4x32xf32>
    %66 = vector.shape_cast %65 : vector<1x4x32xf32> to vector<4x32xf32>
    %67 = vector.shape_cast %64 : vector<4x32xf32> to vector<1x4x32xf32>
    tpu.vector_store %arg8[%c1_32, %c1_33, %c0_34], %67 {strides = array<i32>} : memref<2x5x32xf32, #tpu.memory_space<vmem>>, vector<1x4x32xf32>,
    return
  }
  func.func @transform_0(%arg0: i32) -> (i32, i32) {
    %c0_i32 = arith.constant 0 : i32
    %c0_i32_0 = arith.constant 0 : i32
    return %arg0, %c0_i32 : i32, i32
  }
  func.func @transform_1(%arg0: i32) -> (i32, i32) {
    %c0_i32 = arith.constant 0 : i32
    %c0_i32_0 = arith.constant 0 : i32
    %c0_i32_1 = arith.constant 0 : i32
    return %c0_i32, %c0_i32_0 : i32, i32
  }
  func.func @transform_2(%arg0: i32) -> (i32, i32) {
    %c0_i32 = arith.constant 0 : i32
    %c0_i32_0 = arith.constant 0 : i32
    %c0_i32_1 = arith.constant 0 : i32
    return %c0_i32, %c0_i32_0 : i32, i32
  }
  func.func @transform_3(%arg0: i32) -> (i32, i32) {
    %c0_i32 = arith.constant 0 : i32
    %c0_i32_0 = arith.constant 0 : i32
    %c0_i32_1 = arith.constant 0 : i32
    return %c0_i32, %c0_i32_0 : i32, i32
  }
  func.func @transform_4(%arg0: i32) -> (i32, i32) {
    %c0_i32 = arith.constant 0 : i32
    %c0_i32_0 = arith.constant 0 : i32
    %c0_i32_1 = arith.constant 0 : i32
    return %c0_i32, %c0_i32_0 : i32, i32
  }
  func.func @transform_5(%arg0: i32) -> (i32, i32) {
    %c0_i32 = arith.constant 0 : i32
    %c0_i32_0 = arith.constant 0 : i32
    %c0_i32_1 = arith.constant 0 : i32
    return %c0_i32, %c0_i32_0 : i32, i32
  }
  func.func @transform_6(%arg0: i32) -> (i32, i32) {
    %c0_i32 = arith.constant 0 : i32
    %c0_i32_0 = arith.constant 0 : i32
    %c0_i32_1 = arith.constant 0 : i32
    return %c0_i32, %c0_i32_0 : i32, i32
  }
  func.func @transform_7(%arg0: i32) -> (i32, i32, i32) {
    %c0_i32 = arith.constant 0 : i32
    %c0_i32_0 = arith.constant 0 : i32
    %c0_i32_1 = arith.constant 0 : i32
    return %arg0, %c0_i32, %c0_i32_0 : i32, i32, i32
  }
}

</mosaic_0001>

<bundles_post_ra>
// kernel: tpu_custom_call.1
= control target key start
LH: loop header
LB: loop body
LE: loop exit
PB: predicated region body
PF: predicated region fallthrough
CT: control target
= control target key end

     0   :  { %12 = vsyncpa [#allocation3], 0  ;;  %s627_s0 = inlined_call_operand.hbm [shape: bf16[8,16], index: 0, kind: input, shape index: {}]   ;;  %s628_s1 = inlined_call_operand.hbm [shape: bf16[16,32], index: 1, kind: input, shape index: {}]   ;;  %s629_s2 = inlined_call_operand.hbm [shape: f32[1,32], index: 2, kind: input, shape index: {}]   ;;  %s630_s3 = inlined_call_operand.hbm [shape: f32[1,32], index: 3, kind: input, shape index: {}]   ;;  %s631_s4 = inlined_call_operand.hbm [shape: f32[1,32], index: 4, kind: input, shape index: {}]   ;;  %s632_s5 = inlined_call_operand.hbm [shape: f32[4,32], index: 5, kind: input, shape index: {}]   ;;  %s633_s6 = inlined_call_operand.hbm [shape: f32[1,32], index: 6, kind: input, shape index: {}]   ;;  %s634_s7 = inlined_call_operand.hbm [shape: f32[2,5,32], index: 7, kind: output, shape index: {}]  }
   0x1   :  { %13 = vsyncpa [#allocation6], 0 }
   0x2   :  { %14 = vsyncpa [#allocation9], 0 }
   0x3   :  { %15 = vsyncpa [#allocation12], 0 }
   0x4   :  { %16 = vsyncpa [#allocation4], 0  ;;  %s474_s24 = smov [#allocation5]   ;;  %s288_s28 = scalar_lea.hbm %s628_s1, 128 }
   0x5   :  { %s32_s25 = sshll.u32 %s474_s24, 4  ;;  %p289_p0 = scmp.ne.s32.totalorder %s628_s1, %s288_s28  ;;  %s33_s25 = int_to_ptr.vmem [resolvable:$true] %s32_s25 }
   0x6   :  { %p292_p1 = scmp.lt.u32.totalorder %s288_s28, %s628_s1 }
   0x8   :  { %p294_p2 = pnand %p292_p1, %p289_p0 }
   0xa   :  { %297 = shalt.err (!%p294_p2)
}
   0xb   :  { %s298_s10 = scalar_lea.vmem %s33_s25, 128  ;;  %p303_p4 = scmp.lt.s32.totalorder %s33_s25, %s33_s25 }
   0xc   :  { %p299_p3 = scmp.ne.s32.totalorder %s33_s25, %s298_s10  ;;  %p304_p5 = scmp.lt.s32.totalorder %s298_s10, %s298_s10 }
   0xe   :  { %p305_p6 = por %p304_p5, %p303_p4 }
  0x10   :  { %p306_p7 = pnand %p305_p6, %p299_p3 }
  0x12   :  { %309 = shalt.err (!%p306_p7)
}
  0x13   :  { %s475_s11 = smov 64   ;;  %s476_s12 = smov 4  }
  0x14   :  { %38 = dma.hbm_to_vmem [thread:$0]  %s628_s1, 128, %s33_s25, [#allocation6], %s475_s11, %s475_s11, %s476_s12  }
  0x15   :  { %s477_s15 = smov [#allocation8]   ;;  %s478_s17 = smov [#allocation11]  }
  0x16   :  { %s55_s16 = sshll.u32 %s477_s15, 4  ;;  %s75_s18 = sshll.u32 %s478_s17, 4  ;;  %s56_s16 = int_to_ptr.vmem [resolvable:$true] %s55_s16  ;;  %s76_s18 = int_to_ptr.vmem [resolvable:$true] %s75_s18 }
  0x17   :  { %s310_s21 = scalar_lea.hbm %s630_s3, 16 }
  0x18   :  { %p311_p8 = scmp.ne.s32.totalorder %s630_s3, %s310_s21  ;;  %p314_p9 = scmp.lt.u32.totalorder %s310_s21, %s630_s3 }
  0x1a   :  { %p316_p10 = pnand %p314_p9, %p311_p8 }
  0x1c   :  { %319 = shalt.err (!%p316_p10)
}
  0x1d   :  { %s320_s1 = scalar_lea.vmem %s56_s16, 16  ;;  %s324_s25 = scalar_lea.vmem %s56_s16, 32 }
  0x1e   :  { %p321_p11 = scmp.ne.s32.totalorder %s56_s16, %s320_s1  ;;  %p325_p12 = scmp.lt.s32.totalorder %s56_s16, %s56_s16 }
  0x1f   :  { %p326_p13 = scmp.lt.s32.totalorder %s324_s25, %s320_s1 }
  0x21   :  { %p327_p0 = por %p326_p13, %p325_p12 }
  0x23   :  { %p328_p1 = pnand %p327_p0, %p321_p11 }
  0x25   :  { %331 = shalt.err (!%p328_p1)
}
  0x26   :  { %58 = dma.hbm_to_vmem [thread:$0]  %s630_s3, 16, %s56_s16, [#allocation9]  }
  0x27   :  { %s332_s8 = scalar_lea.hbm %s632_s5, 64 }
  0x28   :  { %p333_p2 = scmp.ne.s32.totalorder %s632_s5, %s332_s8  ;;  %p336_p3 = scmp.lt.u32.totalorder %s332_s8, %s632_s5 }
  0x2a   :  { %p338_p4 = pnand %p336_p3, %p333_p2 }
  0x2c   :  { %341 = shalt.err (!%p338_p4)
}
  0x2d   :  { %s342_s13 = scalar_lea.vmem %s76_s18, 64  ;;  %p347_p6 = scmp.lt.s32.totalorder %s76_s18, %s76_s18 }
  0x2e   :  { %p343_p5 = scmp.ne.s32.totalorder %s76_s18, %s342_s13  ;;  %p348_p7 = scmp.lt.s32.totalorder %s342_s13, %s342_s13 }
  0x30   :  { %p349_p8 = por %p348_p7, %p347_p6 }
  0x32   :  { %p350_p9 = pnand %p349_p8, %p343_p5 }
  0x34   :  { %353 = shalt.err (!%p350_p9)
}
  0x35   :  { %78 = dma.hbm_to_vmem [thread:$0]  %s632_s5, 64, %s76_s18, [#allocation12]  }
  0x36   :  { %s479_s15 = smov [#allocation2]   ;;  %s480_s17 = smov [#allocation7]  }
  0x37   :  { %s23_s16 = sshll.u32 %s479_s15, 4  ;;  %s45_s19 = sshll.u32 %s480_s17, 4  ;;  %s24_s16 = int_to_ptr.vmem [resolvable:$true] %s23_s16  ;;  %s46_s19 = int_to_ptr.vmem [resolvable:$true] %s45_s19 }
  0x38   :  { %s354_s22 = scalar_lea.hbm %s627_s0, 64 }
  0x39   :  { %p355_p10 = scmp.ne.s32.totalorder %s627_s0, %s354_s22  ;;  %p358_p11 = scmp.lt.u32.totalorder %s354_s22, %s627_s0 }
  0x3b   :  { %p360_p12 = pnand %p358_p11, %p355_p10 }
  0x3d   :  { %363 = shalt.err (!%p360_p12)
}
  0x3e   :  { %s364_s5 = scalar_lea.vmem %s24_s16, 64  ;;  %p369_p0 = scmp.lt.s32.totalorder %s24_s16, %s24_s16 }
  0x3f   :  { %p365_p13 = scmp.ne.s32.totalorder %s24_s16, %s364_s5  ;;  %p370_p1 = scmp.lt.s32.totalorder %s364_s5, %s364_s5 }
  0x41   :  { %p371_p2 = por %p370_p1, %p369_p0 }
  0x43   :  { %p372_p3 = pnand %p371_p2, %p365_p13 }
  0x45   :  { %375 = shalt.err (!%p372_p3)
}
  0x46   :  { %26 = dma.hbm_to_vmem [thread:$0]  %s627_s0, 64, %s24_s16, [#allocation3]  }
  0x47   :  { %s376_s29 = scalar_lea.hbm %s629_s2, 16 }
  0x48   :  { %p377_p4 = scmp.ne.s32.totalorder %s629_s2, %s376_s29  ;;  %p380_p5 = scmp.lt.u32.totalorder %s376_s29, %s629_s2 }
  0x4a   :  { %p382_p6 = pnand %p380_p5, %p377_p4 }
  0x4c   :  { %385 = shalt.err (!%p382_p6)
}
  0x4d   :  { %s386_s11 = scalar_lea.vmem %s46_s19, 16  ;;  %s390_s12 = scalar_lea.vmem %s46_s19, 32 }
  0x4e   :  { %p387_p7 = scmp.ne.s32.totalorder %s46_s19, %s386_s11  ;;  %p391_p8 = scmp.lt.s32.totalorder %s46_s19, %s46_s19 }
  0x4f   :  { %p392_p9 = scmp.lt.s32.totalorder %s390_s12, %s386_s11 }
  0x51   :  { %p393_p10 = por %p392_p9, %p391_p8 }
  0x53   :  { %p394_p11 = pnand %p393_p10, %p387_p7 }
  0x55   :  { %397 = shalt.err (!%p394_p11)
}
  0x56   :  { %48 = dma.hbm_to_vmem [thread:$0]  %s629_s2, 16, %s46_s19, [#allocation6]  }
  0x57   :  { %s481_s3 = smov [#allocation10]   ;;  %s482_s15 = smov [#allocation13]  }
  0x58   :  { %s65_s14 = sshll.u32 %s481_s3, 4  ;;  %s85_s16 = sshll.u32 %s482_s15, 4  ;;  %s66_s14 = int_to_ptr.vmem [resolvable:$true] %s65_s14  ;;  %s86_s16 = int_to_ptr.vmem [resolvable:$true] %s85_s16 }
  0x59   :  { %s398_s21 = scalar_lea.hbm %s631_s4, 16 }
  0x5a   :  { %p399_p12 = scmp.ne.s32.totalorder %s631_s4, %s398_s21  ;;  %p402_p13 = scmp.lt.u32.totalorder %s398_s21, %s631_s4 }
  0x5c   :  { %p404_p0 = pnand %p402_p13, %p399_p12 }
  0x5e   :  { %407 = shalt.err (!%p404_p0)
}
  0x5f   :  { %s408_s2 = scalar_lea.vmem %s66_s14, 16  ;;  %s412_s19 = scalar_lea.vmem %s66_s14, 32 }
  0x60   :  { %p409_p1 = scmp.ne.s32.totalorder %s66_s14, %s408_s2  ;;  %p413_p2 = scmp.lt.s32.totalorder %s66_s14, %s66_s14 }
  0x61   :  { %p414_p3 = scmp.lt.s32.totalorder %s412_s19, %s408_s2 }
  0x63   :  { %p415_p4 = por %p414_p3, %p413_p2 }
  0x65   :  { %p416_p5 = pnand %p415_p4, %p409_p1 }
  0x67   :  { %419 = shalt.err (!%p416_p5)
}
  0x68   :  { %68 = dma.hbm_to_vmem [thread:$0]  %s631_s4, 16, %s66_s14, [#allocation9]  }
  0x69   :  { %s420_s27 = scalar_lea.hbm %s633_s6, 16 }
  0x6a   :  { %p421_p6 = scmp.ne.s32.totalorder %s633_s6, %s420_s27  ;;  %p424_p7 = scmp.lt.u32.totalorder %s420_s27, %s633_s6 }
  0x6c   :  { %p426_p8 = pnand %p424_p7, %p421_p6 }
  0x6e   :  { %429 = shalt.err (!%p426_p8)
}
  0x6f   :  { %s430_s9 = scalar_lea.vmem %s86_s16, 16  ;;  %s434_s10 = scalar_lea.vmem %s86_s16, 32 }
  0x70   :  { %p431_p9 = scmp.ne.s32.totalorder %s86_s16, %s430_s9  ;;  %p435_p10 = scmp.lt.s32.totalorder %s86_s16, %s86_s16 }
  0x71   :  { %p436_p11 = scmp.lt.s32.totalorder %s434_s10, %s430_s9 }
  0x73   :  { %p437_p12 = por %p436_p11, %p435_p10 }
  0x75   :  { %p438_p13 = pnand %p437_p12, %p431_p9 }
  0x77   :  { %441 = shalt.err (!%p438_p13)
}
  0x78   :  { %88 = dma.hbm_to_vmem [thread:$0]  %s633_s6, 16, %s86_s16, [#allocation12]  }
  0x79   :  { %464 = dma.done.wait [#allocation3], 64  }
  0x7a   :  { %465 = vsyncadd [#allocation3], 4294967232 }
  0x7b   :  { %466 = dma.done.wait [#allocation6], 144  }
  0x7c   :  { %467 = vsyncadd [#allocation6], 4294967152 }
  0x7d   :  { %468 = dma.done.wait [#allocation9], 32  }
  0x7e   :  { %469 = vsyncadd [#allocation9], 4294967264 }
  0x7f   :  { %470 = dma.done.wait [#allocation12], 80  }
  0x80   :  { %471 = vsyncadd [#allocation12], 4294967216  ;;  %vm113_vm0 = vcmask 130048   ;;  %v111_v0 = vld [vmem:[#allocation2] sm:$0xf]  ;;  %v283_v8 = vld [vmem:[#allocation5] sm:$0xff]  }
  0x81   :  { %v112_v1 = vunpack.c.l.bf16 %v111_v0  ;;  %v483_v9 = vmov 0.0   ;;  %vm484_vm1 = vmmov 0   ;;  %v256_v16 = vld [vmem:[#allocation7] ss:$0 sm:$0xff]  ;;  %vm187_vm2 = vcmask 261120   ;;  %s485_s6 = smov [#allocation14]  }
  0x82   :  { %263 = vmatprep.subr.bf16.mxu0 %v483_v9  ;;  %265 = vmatprep.mubr.msk.bf16.mxu0 %vm484_vm1, %v483_v9  ;;  %v222_v25 = vld [vmem:[#allocation13] sm:$0x1]  ;;  %vm223_vm3 = vcmask 253952   ;;  %v259_v36 = vld [vmem:[#allocation8] ss:$0 sm:$0xff]  ;;  %s241_s12 = sshll.u32 %s485_s6, 4  ;;  %s242_s12 = int_to_ptr.vmem [resolvable:$true] %s241_s12 }
  0x83   :  { %v114_v2 = vsel %vm113_vm0, %v112_v1, 0.0  ;;  %264 = vmatpush3.bf16.msra.mxu0 %v283_v8  ;;  %224 = vst.msk [vmem:[#allocation14] sm:$0x1] %vm223_vm3, %v222_v25  ;;  %229 = vst.msk [vmem:[#allocation14 + $0x8] sm:$0x1] %vm223_vm3, %v222_v25  ;;  %vm226_vm4 = vcmask 257024   ;;  %p447_p1 = scmp.lt.s32.totalorder %s242_s12, %s242_s12 }
  0x84   :  { %115 = vadd.xlane.f32.xlu0 %v114_v2  ;;  %v221_v37 = vld [vmem:[#allocation11] sm:$0xf]  ;;  %v260_v39 = vld [vmem:[#allocation10] ss:$0 sm:$0xff]  ;;  %vm234_vm5 = vcmask 261124   ;;  %s442_s0 = scalar_lea.vmem %s242_s12, 256 }
  0x85   :  { %v231_v41 = vrot.slane %v221_v37, 4  ;;  %p443_p0 = scmp.ne.s32.totalorder %s242_s12, %s442_s0  ;;  %p448_p2 = scmp.lt.s32.totalorder %s442_s0, %s442_s0 }
  0x87   :  { %p449_p3 = por %p448_p2, %p447_p1 }
  0x89   :  { %p450_p4 = pnand %p449_p3, %p443_p0 }
 0x111   :  { %v116_v3 = vpop.xlane.xlu0 %115 }
 0x112   :  { %v118_v4 = vmul.f32 0.0625, %v116_v3 }
 0x114   :  { %v119_v5 = vsub.f32 %v112_v1, %v118_v4 }
 0x116   :  { %v120_v6 = vmul.f32 %v119_v5, %v119_v5 }
 0x118   :  { %v121_v7 = vsel %vm113_vm0, %v120_v6, 0.0 }
 0x119   :  { %122 = vadd.xlane.f32.xlu0 %v121_v7 }
 0x1a6   :  { %v123_v10 = vpop.xlane.xlu0 %122 }
 0x1a7   :  { %v124_v11 = vmul.f32 0.0625, %v123_v10 }
 0x1a9   :  { %v125_v12 = vadd.f32 1e-05, %v124_v11 }
 0x1ab   :  { %284 = vrsqrt.f32 %v125_v12 }
 0x1b5   :  { %v285_v13 = vpop.eup %284 }
 0x1b6   :  { %v127_v14 = vmul.f32 %v285_v13, %v119_v5 }
 0x1b8   :  { %v128_v15 = vpack.c.bf16 %v127_v14, %v127_v14 }
 0x1ba   :  { %266 = vmatmul.mubr.msk.bf16.vlgmr.msra.gmra.mrb[0].mxu0 %vm113_vm0, %v128_v15 }
 0x28d   :  { %v181_v17 = vpop.f32.mrb[0].mxu0 }
 0x28e   :  { %v182_v18 = vadd.f32 %v256_v16, %v181_v17  ;;  %v267_v19 = vpop.f32.mrb[1].mxu0 }
 0x28f   :  { %v184_v20 = vpop.f32.mrb[2].mxu0 }
 0x290   :  { %v268_v21 = vpop.f32.mrb[3].mxu0  ;;  %v188_v22 = vsel %vm187_vm2, %v182_v18, 0.0  ;;  %v193_v23 = vmul.f32 %v182_v18, %v182_v18 }
 0x291   :  { %189 = vadd.xlane.f32.xlu1 %v188_v22 }
 0x292   :  { %v194_v24 = vsel %vm187_vm2, %v193_v23, 0.0 }
 0x295   :  { %195 = vadd.xlane.f32.xlu1 %v194_v24 }
 0x31e   :  { %v190_v26 = vpop.xlane.xlu1 %189 }
 0x31f   :  { %v192_v27 = vmul.f32 0.03125, %v190_v26 }
 0x321   :  { %v198_v29 = vmul.f32 %v192_v27, %v192_v27  ;;  %v201_v34 = vsub.f32 %v182_v18, %v192_v27 }
 0x322   :  { %v196_v28 = vpop.xlane.xlu1 %195 }
 0x323   :  { %v197_v30 = vmul.f32 0.03125, %v196_v28 }
 0x325   :  { %v199_v31 = vsub.f32 %v197_v30, %v198_v29 }
 0x327   :  { %v200_v32 = vmax.f32 %v199_v31, 0.0 }
 0x329   :  { %v202_v33 = vadd.f32 1e-05, %v200_v32 }
 0x32b   :  { %286 = vrsqrt.f32 %v202_v33 }
 0x335   :  { %v287_v35 = vpop.eup %286 }
 0x336   :  { %v204_v38 = vmul.f32 %v287_v35, %v201_v34 }
 0x338   :  { %v212_v40 = vmul.f32 %v259_v36, %v204_v38 }
 0x33a   :  { %v220_v42 = vadd.f32 %v260_v39, %v212_v40 }
 0x33c   :  { %v225_v43 = vadd.f32 %v221_v37, %v220_v42  ;;  %v233_v44 = vadd.f32 %v231_v41, %v220_v42 }
 0x33e   :  { %227 = vst.msk [vmem:[#allocation14 + $0x1] sm:$0xf] %vm226_vm4, %v225_v43 }
 0x33f   :  { %235 = vst.msk [vmem:[#allocation14 + $0x5] sm:$0xf0] %vm234_vm5, %v233_v44 }
 0x340   :  { %453 = shalt.err (!%p450_p4)
}
 0x341   :  { %s454_s14 = scalar_lea.hbm %s634_s7, 256 }
 0x342   :  { %p455_p5 = scmp.ne.s32.totalorder %s634_s7, %s454_s14  ;;  %p458_p6 = scmp.lt.u32.totalorder %s454_s14, %s634_s7 }
 0x344   :  { %p460_p7 = pnand %p458_p6, %p455_p5 }
 0x346   :  { %463 = shalt.err (!%p460_p7)
}
 0x347   :  { %s486_s21 = smov 128   ;;  %s487_s22 = smov 8  }
 0x348   :  { %247 = dma.vmem_to_hbm [thread:$0]  %s242_s12, 256, %s634_s7, [#allocation4], %s486_s21, %s486_s21, %s487_s22  }
 0x349   :  { %472 = dma.done.wait [#allocation4], 256  }
 0x34a   :  { %473 = vsyncadd [#allocation4], 4294967040 }
 0x34b   :  { %251 = vsyncpa [#allocation3], 1 }
 0x34c   :  { %252 = vsyncpa [#allocation6], 1 }
 0x34d   :  { %253 = vsyncpa [#allocation9], 1 }
 0x34e   :  { %254 = vsyncpa [#allocation12], 1 }
 0x34f   :  { %255 = vsyncpa [#allocation4], 1 }

// kernel: tpu_custom_call.1
= control target key start
LH: loop header
LB: loop body
LE: loop exit
PB: predicated region body
PF: predicated region fallthrough
CT: control target
= control target key end

     0   :  { %12 = vsyncpa [#allocation3], 0  ;;  %s627_s0 = inlined_call_operand.hbm [shape: bf16[8,16], index: 0, kind: input, shape index: {}]   ;;  %s628_s1 = inlined_call_operand.hbm [shape: bf16[16,32], index: 1, kind: input, shape index: {}]   ;;  %s629_s2 = inlined_call_operand.hbm [shape: f32[1,32], index: 2, kind: input, shape index: {}]   ;;  %s630_s3 = inlined_call_operand.hbm [shape: f32[1,32], index: 3, kind: input, shape index: {}]   ;;  %s631_s4 = inlined_call_operand.hbm [shape: f32[1,32], index: 4, kind: input, shape index: {}]   ;;  %s632_s5 = inlined_call_operand.hbm [shape: f32[4,32], index: 5, kind: input, shape index: {}]   ;;  %s633_s6 = inlined_call_operand.hbm [shape: f32[1,32], index: 6, kind: input, shape index: {}]   ;;  %s634_s7 = inlined_call_operand.hbm [shape: f32[2,5,32], index: 7, kind: output, shape index: {}]  }
   0x1   :  { %13 = vsyncpa [#allocation6], 0 }
   0x2   :  { %14 = vsyncpa [#allocation9], 0 }
   0x3   :  { %15 = vsyncpa [#allocation12], 0 }
   0x4   :  { %16 = vsyncpa [#allocation4], 0  ;;  %s474_s24 = smov [#allocation5]   ;;  %s288_s28 = scalar_lea.hbm %s628_s1, 128 }
   0x5   :  { %s32_s25 = sshll.u32 %s474_s24, 4  ;;  %p289_p0 = scmp.ne.s32.totalorder %s628_s1, %s288_s28  ;;  %s33_s25 = int_to_ptr.vmem [resolvable:$true] %s32_s25 }
   0x6   :  { %p292_p1 = scmp.lt.u32.totalorder %s288_s28, %s628_s1 }
   0x8   :  { %p294_p2 = pnand %p292_p1, %p289_p0 }
   0xa   :  { %297 = shalt.err (!%p294_p2)
}
   0xb   :  { %s298_s10 = scalar_lea.vmem %s33_s25, 128  ;;  %p303_p4 = scmp.lt.s32.totalorder %s33_s25, %s33_s25 }
   0xc   :  { %p299_p3 = scmp.ne.s32.totalorder %s33_s25, %s298_s10  ;;  %p304_p5 = scmp.lt.s32.totalorder %s298_s10, %s298_s10 }
   0xe   :  { %p305_p6 = por %p304_p5, %p303_p4 }
  0x10   :  { %p306_p7 = pnand %p305_p6, %p299_p3 }
  0x12   :  { %309 = shalt.err (!%p306_p7)
}
  0x13   :  { %s475_s11 = smov 64   ;;  %s476_s12 = smov 4  }
  0x14   :  { %38 = dma.hbm_to_vmem [thread:$0]  %s628_s1, 128, %s33_s25, [#allocation6], %s475_s11, %s475_s11, %s476_s12  }
  0x15   :  { %s477_s15 = smov [#allocation8]   ;;  %s478_s17 = smov [#allocation11]  }
  0x16   :  { %s55_s16 = sshll.u32 %s477_s15, 4  ;;  %s75_s18 = sshll.u32 %s478_s17, 4  ;;  %s56_s16 = int_to_ptr.vmem [resolvable:$true] %s55_s16  ;;  %s76_s18 = int_to_ptr.vmem [resolvable:$true] %s75_s18 }
  0x17   :  { %s310_s21 = scalar_lea.hbm %s630_s3, 16 }
  0x18   :  { %p311_p8 = scmp.ne.s32.totalorder %s630_s3, %s310_s21  ;;  %p314_p9 = scmp.lt.u32.totalorder %s310_s21, %s630_s3 }
  0x1a   :  { %p316_p10 = pnand %p314_p9, %p311_p8 }
  0x1c   :  { %319 = shalt.err (!%p316_p10)
}
  0x1d   :  { %s320_s1 = scalar_lea.vmem %s56_s16, 16  ;;  %s324_s25 = scalar_lea.vmem %s56_s16, 32 }
  0x1e   :  { %p321_p11 = scmp.ne.s32.totalorder %s56_s16, %s320_s1  ;;  %p325_p12 = scmp.lt.s32.totalorder %s56_s16, %s56_s16 }
  0x1f   :  { %p326_p13 = scmp.lt.s32.totalorder %s324_s25, %s320_s1 }
  0x21   :  { %p327_p0 = por %p326_p13, %p325_p12 }
  0x23   :  { %p328_p1 = pnand %p327_p0, %p321_p11 }
  0x25   :  { %331 = shalt.err (!%p328_p1)
}
  0x26   :  { %58 = dma.hbm_to_vmem [thread:$0]  %s630_s3, 16, %s56_s16, [#allocation9]  }
  0x27   :  { %s332_s8 = scalar_lea.hbm %s632_s5, 64 }
  0x28   :  { %p333_p2 = scmp.ne.s32.totalorder %s632_s5, %s332_s8  ;;  %p336_p3 = scmp.lt.u32.totalorder %s332_s8, %s632_s5 }
  0x2a   :  { %p338_p4 = pnand %p336_p3, %p333_p2 }
  0x2c   :  { %341 = shalt.err (!%p338_p4)
}
  0x2d   :  { %s342_s13 = scalar_lea.vmem %s76_s18, 64  ;;  %p347_p6 = scmp.lt.s32.totalorder %s76_s18, %s76_s18 }
  0x2e   :  { %p343_p5 = scmp.ne.s32.totalorder %s76_s18, %s342_s13  ;;  %p348_p7 = scmp.lt.s32.totalorder %s342_s13, %s342_s13 }
  0x30   :  { %p349_p8 = por %p348_p7, %p347_p6 }
  0x32   :  { %p350_p9 = pnand %p349_p8, %p343_p5 }
  0x34   :  { %353 = shalt.err (!%p350_p9)
}
  0x35   :  { %78 = dma.hbm_to_vmem [thread:$0]  %s632_s5, 64, %s76_s18, [#allocation12]  }
  0x36   :  { %s479_s15 = smov [#allocation2]   ;;  %s480_s17 = smov [#allocation7]  }
  0x37   :  { %s23_s16 = sshll.u32 %s479_s15, 4  ;;  %s45_s19 = sshll.u32 %s480_s17, 4  ;;  %s24_s16 = int_to_ptr.vmem [resolvable:$true] %s23_s16  ;;  %s46_s19 = int_to_ptr.vmem [resolvable:$true] %s45_s19 }
  0x38   :  { %s354_s22 = scalar_lea.hbm %s627_s0, 64 }
  0x39   :  { %p355_p10 = scmp.ne.s32.totalorder %s627_s0, %s354_s22  ;;  %p358_p11 = scmp.lt.u32.totalorder %s354_s22, %s627_s0 }
  0x3b   :  { %p360_p12 = pnand %p358_p11, %p355_p10 }
  0x3d   :  { %363 = shalt.err (!%p360_p12)
}
  0x3e   :  { %s364_s5 = scalar_lea.vmem %s24_s16, 64  ;;  %p369_p0 = scmp.lt.s32.totalorder %s24_s16, %s24_s16 }
  0x3f   :  { %p365_p13 = scmp.ne.s32.totalorder %s24_s16, %s364_s5  ;;  %p370_p1 = scmp.lt.s32.totalorder %s364_s5, %s364_s5 }
  0x41   :  { %p371_p2 = por %p370_p1, %p369_p0 }
  0x43   :  { %p372_p3 = pnand %p371_p2, %p365_p13 }
  0x45   :  { %375 = shalt.err (!%p372_p3)
}
  0x46   :  { %26 = dma.hbm_to_vmem [thread:$0]  %s627_s0, 64, %s24_s16, [#allocation3]  }
  0x47   :  { %s376_s29 = scalar_lea.hbm %s629_s2, 16 }
  0x48   :  { %p377_p4 = scmp.ne.s32.totalorder %s629_s2, %s376_s29  ;;  %p380_p5 = scmp.lt.u32.totalorder %s376_s29, %s629_s2 }
  0x4a   :  { %p382_p6 = pnand %p380_p5, %p377_p4 }
  0x4c   :  { %385 = shalt.err (!%p382_p6)
}
  0x4d   :  { %s386_s11 = scalar_lea.vmem %s46_s19, 16  ;;  %s390_s12 = scalar_lea.vmem %s46_s19, 32 }
  0x4e   :  { %p387_p7 = scmp.ne.s32.totalorder %s46_s19, %s386_s11  ;;  %p391_p8 = scmp.lt.s32.totalorder %s46_s19, %s46_s19 }
  0x4f   :  { %p392_p9 = scmp.lt.s32.totalorder %s390_s12, %s386_s11 }
  0x51   :  { %p393_p10 = por %p392_p9, %p391_p8 }
  0x53   :  { %p394_p11 = pnand %p393_p10, %p387_p7 }
  0x55   :  { %397 = shalt.err (!%p394_p11)
}
  0x56   :  { %48 = dma.hbm_to_vmem [thread:$0]  %s629_s2, 16, %s46_s19, [#allocation6]  }
  0x57   :  { %s481_s3 = smov [#allocation10]   ;;  %s482_s15 = smov [#allocation13]  }
  0x58   :  { %s65_s14 = sshll.u32 %s481_s3, 4  ;;  %s85_s16 = sshll.u32 %s482_s15, 4  ;;  %s66_s14 = int_to_ptr.vmem [resolvable:$true] %s65_s14  ;;  %s86_s16 = int_to_ptr.vmem [resolvable:$true] %s85_s16 }
  0x59   :  { %s398_s21 = scalar_lea.hbm %s631_s4, 16 }
  0x5a   :  { %p399_p12 = scmp.ne.s32.totalorder %s631_s4, %s398_s21  ;;  %p402_p13 = scmp.lt.u32.totalorder %s398_s21, %s631_s4 }
  0x5c   :  { %p404_p0 = pnand %p402_p13, %p399_p12 }
  0x5e   :  { %407 = shalt.err (!%p404_p0)
}
  0x5f   :  { %s408_s2 = scalar_lea.vmem %s66_s14, 16  ;;  %s412_s19 = scalar_lea.vmem %s66_s14, 32 }
  0x60   :  { %p409_p1 = scmp.ne.s32.totalorder %s66_s14, %s408_s2  ;;  %p413_p2 = scmp.lt.s32.totalorder %s66_s14, %s66_s14 }
  0x61   :  { %p414_p3 = scmp.lt.s32.totalorder %s412_s19, %s408_s2 }
  0x63   :  { %p415_p4 = por %p414_p3, %p413_p2 }
  0x65   :  { %p416_p5 = pnand %p415_p4, %p409_p1 }
  0x67   :  { %419 = shalt.err (!%p416_p5)
}
  0x68   :  { %68 = dma.hbm_to_vmem [thread:$0]  %s631_s4, 16, %s66_s14, [#allocation9]  }
  0x69   :  { %s420_s27 = scalar_lea.hbm %s633_s6, 16 }
  0x6a   :  { %p421_p6 = scmp.ne.s32.totalorder %s633_s6, %s420_s27  ;;  %p424_p7 = scmp.lt.u32.totalorder %s420_s27, %s633_s6 }
  0x6c   :  { %p426_p8 = pnand %p424_p7, %p421_p6 }
  0x6e   :  { %429 = shalt.err (!%p426_p8)
}
  0x6f   :  { %s430_s9 = scalar_lea.vmem %s86_s16, 16  ;;  %s434_s10 = scalar_lea.vmem %s86_s16, 32 }
  0x70   :  { %p431_p9 = scmp.ne.s32.totalorder %s86_s16, %s430_s9  ;;  %p435_p10 = scmp.lt.s32.totalorder %s86_s16, %s86_s16 }
  0x71   :  { %p436_p11 = scmp.lt.s32.totalorder %s434_s10, %s430_s9 }
  0x73   :  { %p437_p12 = por %p436_p11, %p435_p10 }
  0x75   :  { %p438_p13 = pnand %p437_p12, %p431_p9 }
  0x77   :  { %441 = shalt.err (!%p438_p13)
}
  0x78   :  { %88 = dma.hbm_to_vmem [thread:$0]  %s633_s6, 16, %s86_s16, [#allocation12]  }
  0x79   :  { %464 = dma.done.wait [#allocation3], 64  }
  0x7a   :  { %465 = vsyncadd [#allocation3], 4294967232 }
  0x7b   :  { %466 = dma.done.wait [#allocation6], 144  }
  0x7c   :  { %467 = vsyncadd [#allocation6], 4294967152 }
  0x7d   :  { %468 = dma.done.wait [#allocation9], 32  }
  0x7e   :  { %469 = vsyncadd [#allocation9], 4294967264 }
  0x7f   :  { %470 = dma.done.wait [#allocation12], 80  }
  0x80   :  { %471 = vsyncadd [#allocation12], 4294967216  ;;  %vm113_vm0 = vcmask 130048   ;;  %v111_v0 = vld [vmem:[#allocation2] sm:$0xf]  ;;  %v283_v8 = vld [vmem:[#allocation5] sm:$0xff]  }
  0x81   :  { %v112_v1 = vunpack.c.l.bf16 %v111_v0  ;;  %v483_v9 = vmov 0.0   ;;  %vm484_vm1 = vmmov 0   ;;  %v256_v16 = vld [vmem:[#allocation7] ss:$0 sm:$0xff]  ;;  %vm187_vm2 = vcmask 261120   ;;  %s485_s6 = smov [#allocation14]  }
  0x82   :  { %263 = vmatprep.subr.bf16.mxu0 %v483_v9  ;;  %265 = vmatprep.mubr.msk.bf16.mxu0 %vm484_vm1, %v483_v9  ;;  %v222_v25 = vld [vmem:[#allocation13] sm:$0x1]  ;;  %vm223_vm3 = vcmask 253952   ;;  %v259_v36 = vld [vmem:[#allocation8] ss:$0 sm:$0xff]  ;;  %s241_s12 = sshll.u32 %s485_s6, 4  ;;  %s242_s12 = int_to_ptr.vmem [resolvable:$true] %s241_s12 }
  0x83   :  { %v114_v2 = vsel %vm113_vm0, %v112_v1, 0.0  ;;  %264 = vmatpush3.bf16.msra.mxu0 %v283_v8  ;;  %224 = vst.msk [vmem:[#allocation14] sm:$0x1] %vm223_vm3, %v222_v25  ;;  %229 = vst.msk [vmem:[#allocation14 + $0x8] sm:$0x1] %vm223_vm3, %v222_v25  ;;  %vm226_vm4 = vcmask 257024   ;;  %p447_p1 = scmp.lt.s32.totalorder %s242_s12, %s242_s12 }
  0x84   :  { %115 = vadd.xlane.f32.xlu0 %v114_v2  ;;  %v221_v37 = vld [vmem:[#allocation11] sm:$0xf]  ;;  %v260_v39 = vld [vmem:[#allocation10] ss:$0 sm:$0xff]  ;;  %vm234_vm5 = vcmask 261124   ;;  %s442_s0 = scalar_lea.vmem %s242_s12, 256 }
  0x85   :  { %v231_v41 = vrot.slane %v221_v37, 4  ;;  %p443_p0 = scmp.ne.s32.totalorder %s242_s12, %s442_s0  ;;  %p448_p2 = scmp.lt.s32.totalorder %s442_s0, %s442_s0 }
  0x87   :  { %p449_p3 = por %p448_p2, %p447_p1 }
  0x89   :  { %p450_p4 = pnand %p449_p3, %p443_p0 }
 0x111   :  { %v116_v3 = vpop.xlane.xlu0 %115 }
 0x112   :  { %v118_v4 = vmul.f32 0.0625, %v116_v3 }
 0x114   :  { %v119_v5 = vsub.f32 %v112_v1, %v118_v4 }
 0x116   :  { %v120_v6 = vmul.f32 %v119_v5, %v119_v5 }
 0x118   :  { %v121_v7 = vsel %vm113_vm0, %v120_v6, 0.0 }
 0x119   :  { %122 = vadd.xlane.f32.xlu0 %v121_v7 }
 0x1a6   :  { %v123_v10 = vpop.xlane.xlu0 %122 }
 0x1a7   :  { %v124_v11 = vmul.f32 0.0625, %v123_v10 }
 0x1a9   :  { %v125_v12 = vadd.f32 1e-05, %v124_v11 }
 0x1ab   :  { %284 = vrsqrt.f32 %v125_v12 }
 0x1b5   :  { %v285_v13 = vpop.eup %284 }
 0x1b6   :  { %v127_v14 = vmul.f32 %v285_v13, %v119_v5 }
 0x1b8   :  { %v128_v15 = vpack.c.bf16 %v127_v14, %v127_v14 }
 0x1ba   :  { %266 = vmatmul.mubr.msk.bf16.vlgmr.msra.gmra.mrb[0].mxu0 %vm113_vm0, %v128_v15 }
 0x28d   :  { %v181_v17 = vpop.f32.mrb[0].mxu0 }
 0x28e   :  { %v182_v18 = vadd.f32 %v256_v16, %v181_v17  ;;  %v267_v19 = vpop.f32.mrb[1].mxu0 }
 0x28f   :  { %v184_v20 = vpop.f32.mrb[2].mxu0 }
 0x290   :  { %v268_v21 = vpop.f32.mrb[3].mxu0  ;;  %v188_v22 = vsel %vm187_vm2, %v182_v18, 0.0  ;;  %v193_v23 = vmul.f32 %v182_v18, %v182_v18 }
 0x291   :  { %189 = vadd.xlane.f32.xlu1 %v188_v22 }
 0x292   :  { %v194_v24 = vsel %vm187_vm2, %v193_v23, 0.0 }
 0x295   :  { %195 = vadd.xlane.f32.xlu1 %v194_v24 }
 0x31e   :  { %v190_v26 = vpop.xlane.xlu1 %189 }
 0x31f   :  { %v192_v27 = vmul.f32 0.03125, %v190_v26 }
 0x321   :  { %v198_v29 = vmul.f32 %v192_v27, %v192_v27  ;;  %v201_v34 = vsub.f32 %v182_v18, %v192_v27 }
 0x322   :  { %v196_v28 = vpop.xlane.xlu1 %195 }
 0x323   :  { %v197_v30 = vmul.f32 0.03125, %v196_v28 }
 0x325   :  { %v199_v31 = vsub.f32 %v197_v30, %v198_v29 }
 0x327   :  { %v200_v32 = vmax.f32 %v199_v31, 0.0 }
 0x329   :  { %v202_v33 = vadd.f32 1e-05, %v200_v32 }
 0x32b   :  { %286 = vrsqrt.f32 %v202_v33 }
 0x335   :  { %v287_v35 = vpop.eup %286 }
 0x336   :  { %v204_v38 = vmul.f32 %v287_v35, %v201_v34 }
 0x338   :  { %v212_v40 = vmul.f32 %v259_v36, %v204_v38 }
 0x33a   :  { %v220_v42 = vadd.f32 %v260_v39, %v212_v40 }
 0x33c   :  { %v225_v43 = vadd.f32 %v221_v37, %v220_v42  ;;  %v233_v44 = vadd.f32 %v231_v41, %v220_v42 }
 0x33e   :  { %227 = vst.msk [vmem:[#allocation14 + $0x1] sm:$0xf] %vm226_vm4, %v225_v43 }
 0x33f   :  { %235 = vst.msk [vmem:[#allocation14 + $0x5] sm:$0xf0] %vm234_vm5, %v233_v44 }
 0x340   :  { %453 = shalt.err (!%p450_p4)
}
 0x341   :  { %s454_s14 = scalar_lea.hbm %s634_s7, 256 }
 0x342   :  { %p455_p5 = scmp.ne.s32.totalorder %s634_s7, %s454_s14  ;;  %p458_p6 = scmp.lt.u32.totalorder %s454_s14, %s634_s7 }
 0x344   :  { %p460_p7 = pnand %p458_p6, %p455_p5 }
 0x346   :  { %463 = shalt.err (!%p460_p7)
}
 0x347   :  { %s486_s21 = smov 128   ;;  %s487_s22 = smov 8  }
 0x348   :  { %247 = dma.vmem_to_hbm [thread:$0]  %s242_s12, 256, %s634_s7, [#allocation4], %s486_s21, %s486_s21, %s487_s22  }
 0x349   :  { %472 = dma.done.wait [#allocation4], 256  }
 0x34a   :  { %473 = vsyncadd [#allocation4], 4294967040 }
 0x34b   :  { %251 = vsyncpa [#allocation3], 1 }
 0x34c   :  { %252 = vsyncpa [#allocation6], 1 }
 0x34d   :  { %253 = vsyncpa [#allocation9], 1 }
 0x34e   :  { %254 = vsyncpa [#allocation12], 1 }
 0x34f   :  { %255 = vsyncpa [#allocation4], 1 }

</bundles_post_ra>
